<compile_context>
chip_gen: v7x
topology: tpu7x:2x2x1
jax: 0.10.0
libtpu: 0.0.40
codegen_flags: <defaults>
</compile_context>

<pallas_src>
import functools

import jax
import jax.numpy as jnp
from jax.experimental import pallas as pl
from jax.experimental.pallas import tpu as pltpu


LANES = 128   # TPU vreg lane width; feature dims padded to a multiple of this.


# ---------------------------------------------------------------------------
# Fused Pallas kernel
# ---------------------------------------------------------------------------
def _fused_gcn_kernel(x_hbm, a_hbm, w_ref, b_ref, wh_ref, bh_ref, o_ref,
                      a_vmem, h_scr, pool_scr, *, tile_m, num_nodes):
    """Grid = (num_layers, num_row_tiles). A_hat + activations stay in VMEM."""
    l = pl.program_id(0)
    r = pl.program_id(1)
    num_l = pl.num_programs(0)
    num_r = pl.num_programs(1)

    n_pad = a_vmem.shape[0]      # padded node count (static)

    # First grid step: DMA A_hat and the padded node features (staged as
    # "H_{-1}" into ping-pong slot 1) from HBM into VMEM exactly once, and zero
    # the pooled-sum accumulator.  Single-buffered: no pipeline double buffer.
    @pl.when((l == 0) & (r == 0))
    def _():
        pltpu.sync_copy(a_hbm, a_vmem)
        pltpu.sync_copy(x_hbm, h_scr.at[pl.ds(n_pad, n_pad), :])
        pool_scr[...] = jnp.zeros_like(pool_scr)

    # Layer l reads slot (l+1) % 2 and writes slot l % 2 of the activation
    # scratch (laid out flat as [2 * n_pad, F_PAD]).
    read_off = pl.multiple_of(((l + 1) % 2) * n_pad, tile_m)
    write_off = pl.multiple_of((l % 2) * n_pad + r * tile_m, tile_m)
    a_row_off = pl.multiple_of(r * tile_m, tile_m)

    h_prev = h_scr[pl.ds(read_off, n_pad), :]       # [n_pad, F_PAD]   bf16
    a_tile = a_vmem[pl.ds(a_row_off, tile_m), :]    # [tile_m, n_pad]  bf16

    # ReLU(A_hat_tile @ H_prev @ W_l + b_l): bf16 MXU inputs, f32 accumulation,
    # f32 bias + ReLU epilogue.  agg is consumed immediately in bf16 so its f32
    # copy does not stay live across the second matmul.
    agg = jnp.dot(a_tile, h_prev, preferred_element_type=jnp.float32)
    z = jnp.dot(agg.astype(jnp.bfloat16), w_ref[0],
                preferred_element_type=jnp.float32)
    h_new = jnp.maximum(z + b_ref[0], 0.0)          # [tile_m, F_PAD] f32

    h_scr[pl.ds(write_off, tile_m), :] = h_new.astype(h_scr.dtype)

    # Last layer: masked mean-pool accumulation on the VPU/XLU (no M=1 MXU
    # matvec).  Mask is 1/N on real rows, 0 on padded rows, so ReLU(b) garbage
    # sitting on padded rows never reaches the output.
    @pl.when(l == num_l - 1)
    def _():
        row_ids = jax.lax.broadcasted_iota(jnp.int32, h_new.shape, 0) + r * tile_m
        contrib = jnp.where(row_ids < num_nodes, h_new * (1.0 / num_nodes), 0.0)
        pool_scr[...] += jnp.sum(contrib, axis=0, keepdims=True)

    # Final grid step: linear head on the pooled vector (dropout is identity at
    # inference, so it is omitted).
    @pl.when((l == num_l - 1) & (r == num_r - 1))
    def _():
        o_ref[...] = (
            jnp.dot(pool_scr[...].astype(jnp.bfloat16), wh_ref[...],
                    preferred_element_type=jnp.float32)
            + bh_ref[...]
        )


# ---------------------------------------------------------------------------
# Wrapper: padding, casting, pallas_call
# ---------------------------------------------------------------------------
def _round_up(v, m):
    return ((v + m - 1) // m) * m


def _pick_row_tile():
    """256-tall row tiles on 256-wide-MXU parts (v6e/v7x), 128 on v5e/older."""
    try:
        kind = jax.devices()[0].device_kind.lower()
    except Exception:
        return 128
    if any(old in kind for old in ("v2", "v3", "v4", "v5")):
        return 128
    return 256


@jax.jit
def gnn_forward(x, a_hat, layer_ws, layer_bs, head_w, head_b):
    n, in_dim = x.shape
    hidden = layer_ws[0].shape[1]
    out_dim = head_w.shape[1]
    num_layers = len(layer_ws)

    tm = _pick_row_tile()
    f_pad = _round_up(max(in_dim, hidden, out_dim), LANES)
    n_pad = _round_up(n, tm)
    num_row_tiles = n_pad // tm

    f32, bf16 = jnp.float32, jnp.bfloat16

    # Zero-pad + cast. Padded rows of H pick up ReLU(b) garbage, but A_hat's
    # padded columns are exactly zero and the pool mask is zero there, so they
    # never leak into real outputs; padded feature columns stay exactly zero.
    x_p = jnp.zeros((n_pad, f_pad), bf16).at[:n, :in_dim].set(x.astype(bf16))
    a_p = jnp.zeros((n_pad, n_pad), bf16).at[:n, :n].set(a_hat.astype(bf16))

    w_stack = jnp.zeros((num_layers, f_pad, f_pad), bf16)
    b_stack = jnp.zeros((num_layers, 1, f_pad), f32)
    for i, (w, b) in enumerate(zip(layer_ws, layer_bs)):
        w_stack = w_stack.at[i, :w.shape[0], :w.shape[1]].set(w.astype(bf16))
        b_stack = b_stack.at[i, :, :b.shape[1]].set(b.astype(f32))

    wh_p = jnp.zeros((f_pad, f_pad), bf16).at[:hidden, :out_dim].set(
        head_w.astype(bf16))
    bh_p = jnp.zeros((1, f_pad), f32).at[:, :out_dim].set(head_b.astype(f32))

    # Resident-VMEM footprint: single-buffered A + ping-pong H + per-layer
    # weights (double-buffered by the pipeline) + f32 matmul temporaries.
    vmem_needed = (
        n_pad * n_pad * 2                           # resident A_hat (bf16)
        + 2 * n_pad * f_pad * 2                     # ping-pong activations (bf16)
        + 2 * (f_pad * f_pad * 2 + f_pad * 4)       # W_l / b_l pipeline buffers
        + 2 * (f_pad * f_pad * 2 + f_pad * 4)       # W_head / b_head buffers
        + 8 * tm * f_pad * 4                        # f32 matmul temps / epilogue
        + (2 << 20)                                 # compiler-internal headroom
    )
    # TODO(synk): fall back to a streamed-A (row-tile BlockSpec) variant for
    # graphs whose dense A_hat does not fit this budget (~5K nodes).
    assert vmem_needed <= 48 * 1024 * 1024, (
        f"dense A_hat ({n_pad}x{n_pad}) does not fit the resident-VMEM layout")
    vmem_limit = int(min(max(vmem_needed, 16 << 20), 48 << 20))

    kernel = functools.partial(_fused_gcn_kernel, tile_m=tm, num_nodes=n)

    out_padded = pl.pallas_call(
        kernel,
        out_shape=jax.ShapeDtypeStruct((1, f_pad), f32),
        grid=(num_layers, num_row_tiles),
        in_specs=[
            pl.BlockSpec(memory_space=pl.ANY),                        # X (HBM)
            pl.BlockSpec(memory_space=pl.ANY),                        # A_hat (HBM)
            pl.BlockSpec((1, f_pad, f_pad), lambda l, r: (l, 0, 0)),  # W_l
            pl.BlockSpec((1, 1, f_pad), lambda l, r: (l, 0, 0)),      # b_l
            pl.BlockSpec((f_pad, f_pad), lambda l, r: (0, 0)),        # W_head
            pl.BlockSpec((1, f_pad), lambda l, r: (0, 0)),            # b_head
        ],
        out_specs=pl.BlockSpec((1, f_pad), lambda l, r: (0, 0)),
        scratch_shapes=[
            pltpu.VMEM((n_pad, n_pad), bf16),       # resident A_hat
            pltpu.VMEM((2 * n_pad, f_pad), bf16),   # ping-pong activations H
            pltpu.VMEM((1, f_pad), f32),            # pooled-sum accumulator
        ],
        compiler_params=pltpu.CompilerParams(
            # Both axes are true sequential dependencies (layer l+1 needs every
            # row tile of layer l), so neither can be marked "parallel".
            dimension_semantics=("arbitrary", "arbitrary"),
            vmem_limit_bytes=vmem_limit,
        ),
    )(x_p, a_p, w_stack, b_stack, wh_p, bh_p)

    return out_padded[:, :out_dim]


# ---------------------------------------------------------------------------
# Glue: normalized adjacency + parameter init
# ---------------------------------------------------------------------------
def build_normalized_adjacency(edge_index, num_nodes):
    """A_hat = D^-1/2 (A + I) D^-1/2 from a [2, E] edge_index."""
    # TODO(synk): PyG GCNConv counts duplicate edges, keeps directed edges
    # directed, and does not double-weight pre-existing self-loops; this dense
    # build dedupes, symmetrizes, and adds +I unconditionally.
    src, dst = edge_index[0], edge_index[1]
    a = jnp.zeros((num_nodes, num_nodes), jnp.float32)
    a = a.at[src, dst].set(1.0)
    a = a.at[dst, src].set(1.0)
    a = a + jnp.eye(num_nodes, dtype=jnp.float32)
    deg = jnp.sum(a, axis=1)
    d_inv_sqrt = jnp.where(deg > 0, 1.0 / jnp.sqrt(deg), 0.0)
    return d_inv_sqrt[:, None] * a * d_inv_sqrt[None, :]


def init_params(key, in_dim, hidden_dim, out_dim, num_layers):
    dims = [in_dim] + [hidden_dim] * num_layers
    params = {"layers": [], "head": None}
    for i in range(num_layers):
        key, kw, kb = jax.random.split(key, 3)
        w = jax.random.normal(kw, (dims[i], dims[i + 1]), jnp.float32) * 0.1
        b = jax.random.normal(kb, (1, dims[i + 1]), jnp.float32) * 0.01
        params["layers"].append((w, b))
    key, kw, kb = jax.random.split(key, 3)
    w_h = jax.random.normal(kw, (hidden_dim, out_dim), jnp.float32) * 0.1
    b_h = jax.random.normal(kb, (1, out_dim), jnp.float32) * 0.01
    params["head"] = (w_h, b_h)
    return params


# ---------------------------------------------------------------------------
# Test harness
# ---------------------------------------------------------------------------
if __name__ == "__main__":
    N = 16          # number of nodes
    E = 40          # number of edges
    IN_DIM = 8
    HIDDEN_DIM = 32
    OUT_DIM = 4
    NUM_LAYERS = 2

    key = jax.random.PRNGKey(0)
    key, kx, ke1, ke2, kp = jax.random.split(key, 5)

    x = jax.random.normal(kx, (N, IN_DIM), jnp.float32)
    edge_index = jnp.stack(
        [jax.random.randint(ke1, (E,), 0, N),
         jax.random.randint(ke2, (E,), 0, N)],
        axis=0,
    )

    a_hat = build_normalized_adjacency(edge_index, N)
    params = init_params(kp, IN_DIM, HIDDEN_DIM, OUT_DIM, NUM_LAYERS)
    layer_ws = tuple(w for w, _ in params["layers"])
    layer_bs = tuple(b for _, b in params["layers"])
    head_w, head_b = params["head"]

    out = gnn_forward(x, a_hat, layer_ws, layer_bs, head_w, head_b)
    out = jax.block_until_ready(out)

    # Pure-JAX f32 reference of the same forward pass (kernel uses bf16 MXU
    # inputs with f32 accumulation, hence the looser tolerance).
    h_ref = x
    for w, b in zip(layer_ws, layer_bs):
        h_ref = jnp.maximum(a_hat @ h_ref @ w + b, 0.0)
    ref = jnp.mean(h_ref, axis=0, keepdims=True) @ head_w + head_b

    assert out.shape == (1, OUT_DIM)
    assert jnp.allclose(out, ref, atol=2e-2, rtol=2e-2), (
        f"max abs err {float(jnp.max(jnp.abs(out - ref))):.3e}")

    print("KERNEL_OK")
</pallas_src>

<mosaic_0001>
module attributes {stable_mosaic.version = 11 : i64} {
  func.func @_fused_gcn_kernel(%arg0: i32, %arg1: i32, %arg2: memref<256x128xbf16, #tpu.memory_space<any>>, %arg3: memref<256x256xbf16, #tpu.memory_space<any>>, %arg4: memref<1x128x128xbf16, #tpu.memory_space<vmem>>, %arg5: memref<1x1x128xf32, #tpu.memory_space<vmem>>, %arg6: memref<128x128xbf16, #tpu.memory_space<vmem>>, %arg7: memref<1x128xf32, #tpu.memory_space<vmem>>, %arg8: memref<1x128xf32, #tpu.memory_space<vmem>>, %arg9: memref<256x256xbf16, #tpu.memory_space<vmem>>, %arg10: memref<512x128xbf16, #tpu.memory_space<vmem>>, %arg11: memref<1x128xf32, #tpu.memory_space<vmem>>) attributes {dimension_semantics = [#tpu.dimension_semantics<arbitrary>, #tpu.dimension_semantics<arbitrary>], iteration_bounds = array<i64: 2, 1>, scalar_prefetch = 0 : i64, scratch_operands = 3 : i64, tpu.core_type = #tpu.core_type<tc>, window_params = [{}, {}, {transform_indices = @transform_2, window_bounds = array<i64: 1, 128, 128>}, {transform_indices = @transform_3, window_bounds = array<i64: 1, 1, 128>}, {pipeline_mode = #tpu.pipeline_mode<synchronous>, transform_indices = @transform_4, window_bounds = array<i64: 128, 128>}, {pipeline_mode = #tpu.pipeline_mode<synchronous>, transform_indices = @transform_5, window_bounds = array<i64: 1, 128>}, {pipeline_mode = #tpu.pipeline_mode<synchronous>, transform_indices = @transform_6, window_bounds = array<i64: 1, 128>}]} {
    %c0_i32 = arith.constant 0 : i32
    %0 = arith.cmpi eq, %arg0, %c0_i32 : i32
    %c0_i32_0 = arith.constant 0 : i32
    %1 = arith.cmpi eq, %arg1, %c0_i32_0 : i32
    %2 = arith.andi %0, %1 : i1
    %3 = arith.extui %2 : i1 to i32
    %c0_i32_1 = arith.constant 0 : i32
    %4 = arith.cmpi ne, %3, %c0_i32_1 : i32
    scf.if %4 {
      "tpu.region"() ({
        %62 = tpu.sem_alloc : memref<!tpu.dma_semaphore, #tpu.memory_space<semaphore_mem>>
        tpu.enqueue_dma source(%arg3 : memref<256x256xbf16, #tpu.memory_space<any>>) target(%arg9 : memref<256x256xbf16, #tpu.memory_space<vmem>>) target_semaphore(%62 : memref<!tpu.dma_semaphore, #tpu.memory_space<semaphore_mem>>)
        tpu.wait_dma2 semaphore(%62 : memref<!tpu.dma_semaphore, #tpu.memory_space<semaphore_mem>>) src(%arg3 : memref<256x256xbf16, #tpu.memory_space<any>>) dst(%arg9 : memref<256x256xbf16, #tpu.memory_space<vmem>>)
        tpu.yield
      }) : () -> ()
      "tpu.region"() ({
        %62 = tpu.sem_alloc : memref<!tpu.dma_semaphore, #tpu.memory_space<semaphore_mem>>
        %c256_i32_34 = arith.constant 256 : i32
        %c0_i32_35 = arith.constant 0 : i32
        %63 = tpu.memref_slice %arg10[%c256_i32_34, %c0_i32_35] : memref<512x128xbf16, #tpu.memory_space<vmem>> -> memref<256x128xbf16, #tpu.memory_space<vmem>>
        tpu.enqueue_dma source(%arg2 : memref<256x128xbf16, #tpu.memory_space<any>>) target(%63 : memref<256x128xbf16, #tpu.memory_space<vmem>>) target_semaphore(%62 : memref<!tpu.dma_semaphore, #tpu.memory_space<semaphore_mem>>)
        %c256_i32_36 = arith.constant 256 : i32
        %c0_i32_37 = arith.constant 0 : i32
        %64 = tpu.memref_slice %arg10[%c256_i32_36, %c0_i32_37] : memref<512x128xbf16, #tpu.memory_space<vmem>> -> memref<256x128xbf16, #tpu.memory_space<vmem>>
        tpu.wait_dma2 semaphore(%62 : memref<!tpu.dma_semaphore, #tpu.memory_space<semaphore_mem>>) src(%arg2 : memref<256x128xbf16, #tpu.memory_space<any>>) dst(%64 : memref<256x128xbf16, #tpu.memory_space<vmem>>)
        tpu.yield
      }) : () -> ()
      %cst_31 = arith.constant 0.000000e+00 : f32
      %60 = vector.broadcast %cst_31 : f32 to vector<1x128xf32>
      %c0_32 = arith.constant 0 : index
      %c0_33 = arith.constant 0 : index
      %61 = vector.load %arg11[%c0_32, %c0_33] : memref<1x128xf32, #tpu.memory_space<vmem>>, vector<1x128xf32>
      tpu.vector_store %arg11[%c0_32, %c0_33], %60 {strides = array<i32>} : memref<1x128xf32, #tpu.memory_space<vmem>>, vector<1x128xf32>,
    } else {
    }
    %c1_i32 = arith.constant 1 : i32
    %5 = arith.addi %arg0, %c1_i32 : i32
    %c2_i32 = arith.constant 2 : i32
    %c0_i32_2 = arith.constant 0 : i32
    %6 = arith.cmpi eq, %c2_i32, %c0_i32_2 : i32
    %c1_i32_3 = arith.constant 1 : i32
    %7 = arith.select %6, %c1_i32_3, %c2_i32 : i32
    %8 = arith.remsi %5, %7 : i32
    %c0_i32_4 = arith.constant 0 : i32
    %9 = arith.cmpi ne, %8, %c0_i32_4 : i32
    %c0_i32_5 = arith.constant 0 : i32
    %10 = arith.cmpi slt, %8, %c0_i32_5 : i32
    %c0_i32_6 = arith.constant 0 : i32
    %11 = arith.cmpi slt, %7, %c0_i32_6 : i32
    %12 = arith.xori %10, %11 : i1
    %13 = arith.andi %12, %9 : i1
    %14 = arith.addi %8, %7 : i32
    %15 = arith.select %13, %14, %8 : i32
    %c256_i32 = arith.constant 256 : i32
    %16 = arith.muli %15, %c256_i32 : i32
    %17 = tpu.assume_multiple %16, 256 : i32
    %c2_i32_7 = arith.constant 2 : i32
    %c0_i32_8 = arith.constant 0 : i32
    %18 = arith.cmpi eq, %c2_i32_7, %c0_i32_8 : i32
    %c1_i32_9 = arith.constant 1 : i32
    %19 = arith.select %18, %c1_i32_9, %c2_i32_7 : i32
    %20 = arith.remsi %arg0, %19 : i32
    %c0_i32_10 = arith.constant 0 : i32
    %21 = arith.cmpi ne, %20, %c0_i32_10 : i32
    %c0_i32_11 = arith.constant 0 : i32
    %22 = arith.cmpi slt, %20, %c0_i32_11 : i32
    %c0_i32_12 = arith.constant 0 : i32
    %23 = arith.cmpi slt, %19, %c0_i32_12 : i32
    %24 = arith.xori %22, %23 : i1
    %25 = arith.andi %24, %21 : i1
    %26 = arith.addi %20, %19 : i32
    %27 = arith.select %25, %26, %20 : i32
    %c256_i32_13 = arith.constant 256 : i32
    %28 = arith.muli %27, %c256_i32_13 : i32
    %c256_i32_14 = arith.constant 256 : i32
    %29 = arith.muli %arg1, %c256_i32_14 : i32
    %30 = arith.addi %28, %29 : i32
    %31 = tpu.assume_multiple %30, 256 : i32
    %c256_i32_15 = arith.constant 256 : i32
    %32 = arith.muli %arg1, %c256_i32_15 : i32
    %33 = tpu.assume_multiple %32, 256 : i32
    %34 = arith.index_cast %17 : i32 to index
    %c0 = arith.constant 0 : index
    %35 = vector.load %arg10[%34, %c0] : memref<512x128xbf16, #tpu.memory_space<vmem>>, vector<256x128xbf16>
    %36 = arith.index_cast %33 : i32 to index
    %c0_16 = arith.constant 0 : index
    %37 = vector.load %arg9[%36, %c0_16] : memref<256x256xbf16, #tpu.memory_space<vmem>>, vector<256x256xbf16>
    %cst = arith.constant dense<0.000000e+00> : vector<256x128xf32>
    %38 = tpu.matmul %37, %35, %cst {dimension_numbers = #tpu.dot_dimension_numbers<[1], [0], [0], [1], [0, 0, 1, 1], [], []>} : vector<256x256xbf16>, vector<256x128xbf16>, vector<256x128xf32> -> vector<256x128xf32>
    %39 = arith.truncf %38 : vector<256x128xf32> to vector<256x128xbf16>
    %c0_17 = arith.constant 0 : index
    %c0_18 = arith.constant 0 : index
    %c0_19 = arith.constant 0 : index
    %40 = vector.load %arg4[%c0_17, %c0_18, %c0_19] : memref<1x128x128xbf16, #tpu.memory_space<vmem>>, vector<1x128x128xbf16>
    %41 = vector.shape_cast %40 : vector<1x128x128xbf16> to vector<128x128xbf16>
    %cst_20 = arith.constant dense<0.000000e+00> : vector<256x128xf32>
    %42 = tpu.matmul %39, %41, %cst_20 {dimension_numbers = #tpu.dot_dimension_numbers<[1], [0], [0], [1], [0, 0, 1, 1], [], []>} : vector<256x128xbf16>, vector<128x128xbf16>, vector<256x128xf32> -> vector<256x128xf32>
    %c0_21 = arith.constant 0 : index
    %c0_22 = arith.constant 0 : index
    %c0_23 = arith.constant 0 : index
    %43 = vector.load %arg5[%c0_21, %c0_22, %c0_23] : memref<1x1x128xf32, #tpu.memory_space<vmem>>, vector<1x1x128xf32>
    %44 = vector.shape_cast %43 : vector<1x1x128xf32> to vector<1x128xf32>
    %45 = vector.broadcast %44 : vector<1x128xf32> to vector<256x128xf32>
    %46 = arith.addf %42, %45 : vector<256x128xf32>
    %cst_24 = arith.constant 0.000000e+00 : f32
    %47 = vector.broadcast %cst_24 : f32 to vector<256x128xf32>
    %48 = arith.maximumf %46, %47 : vector<256x128xf32>
    %49 = arith.truncf %48 : vector<256x128xf32> to vector<256x128xbf16>
    %50 = arith.index_cast %31 : i32 to index
    %c0_25 = arith.constant 0 : index
    %51 = vector.load %arg10[%50, %c0_25] : memref<512x128xbf16, #tpu.memory_space<vmem>>, vector<256x128xbf16>
    tpu.vector_store %arg10[%50, %c0_25], %49 {strides = array<i32>} : memref<512x128xbf16, #tpu.memory_space<vmem>>, vector<256x128xbf16>,
    %c1_i32_26 = arith.constant 1 : i32
    %52 = arith.cmpi eq, %arg0, %c1_i32_26 : i32
    %53 = arith.extui %52 : i1 to i32
    %c0_i32_27 = arith.constant 0 : i32
    %54 = arith.cmpi ne, %53, %c0_i32_27 : i32
    scf.if %54 {
      %60 = tpu.iota {dimensions = array<i32: 0>} : vector<256x128xi32>
      %c256_i32_31 = arith.constant 256 : i32
      %61 = arith.muli %arg1, %c256_i32_31 : i32
      %62 = vector.broadcast %61 : i32 to vector<256x128xi32>
      %63 = arith.addi %60, %62 : vector<256x128xi32>
      %c16_i32 = arith.constant 16 : i32
      %64 = vector.broadcast %c16_i32 : i32 to vector<256x128xi32>
      %65 = arith.cmpi slt, %63, %64 : vector<256x128xi32>
      %cst_32 = arith.constant 6.250000e-02 : f32
      %66 = vector.broadcast %cst_32 : f32 to vector<256x128xf32>
      %67 = arith.mulf %48, %66 : vector<256x128xf32>
      %cst_33 = arith.constant 0.000000e+00 : f32
      %68 = vector.broadcast %cst_33 : f32 to vector<256x128xf32>
      %69 = arith.select %65, %67, %68 : vector<256x128xi1>, vector<256x128xf32>
      %c0_34 = arith.constant 0 : index
      %c0_35 = arith.constant 0 : index
      %70 = vector.load %arg11[%c0_34, %c0_35] : memref<1x128xf32, #tpu.memory_space<vmem>>, vector<1x128xf32>
      %cst_36 = arith.constant dense<0.000000e+00> : vector<128xf32>
      %71 = vector.multi_reduction <add>, %69, %cst_36 [0] : vector<256x128xf32> to vector<128xf32>
      %72 = vector.shape_cast %71 : vector<128xf32> to vector<1x128xf32>
      %73 = arith.addf %70, %72 : vector<1x128xf32>
      %c0_37 = arith.constant 0 : index
      %c0_38 = arith.constant 0 : index
      %74 = vector.load %arg11[%c0_37, %c0_38] : memref<1x128xf32, #tpu.memory_space<vmem>>, vector<1x128xf32>
      tpu.vector_store %arg11[%c0_37, %c0_38], %73 {strides = array<i32>} : memref<1x128xf32, #tpu.memory_space<vmem>>, vector<1x128xf32>,
    } else {
    }
    %c1_i32_28 = arith.constant 1 : i32
    %55 = arith.cmpi eq, %arg0, %c1_i32_28 : i32
    %c0_i32_29 = arith.constant 0 : i32
    %56 = arith.cmpi eq, %arg1, %c0_i32_29 : i32
    %57 = arith.andi %55, %56 : i1
    %58 = arith.extui %57 : i1 to i32
    %c0_i32_30 = arith.constant 0 : i32
    %59 = arith.cmpi ne, %58, %c0_i32_30 : i32
    scf.if %59 {
      %c0_31 = arith.constant 0 : index
      %c0_32 = arith.constant 0 : index
      %60 = vector.load %arg11[%c0_31, %c0_32] : memref<1x128xf32, #tpu.memory_space<vmem>>, vector<1x128xf32>
      %61 = arith.truncf %60 : vector<1x128xf32> to vector<1x128xbf16>
      %c0_33 = arith.constant 0 : index
      %c0_34 = arith.constant 0 : index
      %62 = vector.load %arg6[%c0_33, %c0_34] : memref<128x128xbf16, #tpu.memory_space<vmem>>, vector<128x128xbf16>
      %cst_35 = arith.constant dense<0.000000e+00> : vector<1x128xf32>
      %63 = tpu.matmul %61, %62, %cst_35 {dimension_numbers = #tpu.dot_dimension_numbers<[1], [0], [0], [1], [0, 0, 1, 1], [], []>} : vector<1x128xbf16>, vector<128x128xbf16>, vector<1x128xf32> -> vector<1x128xf32>
      %c0_36 = arith.constant 0 : index
      %c0_37 = arith.constant 0 : index
      %64 = vector.load %arg7[%c0_36, %c0_37] : memref<1x128xf32, #tpu.memory_space<vmem>>, vector<1x128xf32>
      %65 = arith.addf %63, %64 : vector<1x128xf32>
      %c0_38 = arith.constant 0 : index
      %c0_39 = arith.constant 0 : index
      %66 = vector.load %arg8[%c0_38, %c0_39] : memref<1x128xf32, #tpu.memory_space<vmem>>, vector<1x128xf32>
      tpu.vector_store %arg8[%c0_38, %c0_39], %65 {strides = array<i32>} : memref<1x128xf32, #tpu.memory_space<vmem>>, vector<1x128xf32>,
    } else {
    }
    return
  }
  func.func @transform_2(%arg0: i32, %arg1: i32) -> (i32, i32, i32) {
    %c0_i32 = arith.constant 0 : i32
    %c0_i32_0 = arith.constant 0 : i32
    %c0_i32_1 = arith.constant 0 : i32
    return %arg0, %c0_i32, %c0_i32_0 : i32, i32, i32
  }
  func.func @transform_3(%arg0: i32, %arg1: i32) -> (i32, i32, i32) {
    %c0_i32 = arith.constant 0 : i32
    %c0_i32_0 = arith.constant 0 : i32
    %c0_i32_1 = arith.constant 0 : i32
    return %arg0, %c0_i32, %c0_i32_0 : i32, i32, i32
  }
  func.func @transform_4(%arg0: i32, %arg1: i32) -> (i32, i32) {
    %c0_i32 = arith.constant 0 : i32
    %c0_i32_0 = arith.constant 0 : i32
    %c0_i32_1 = arith.constant 0 : i32
    return %c0_i32, %c0_i32_0 : i32, i32
  }
  func.func @transform_5(%arg0: i32, %arg1: i32) -> (i32, i32) {
    %c0_i32 = arith.constant 0 : i32
    %c0_i32_0 = arith.constant 0 : i32
    %c0_i32_1 = arith.constant 0 : i32
    return %c0_i32, %c0_i32_0 : i32, i32
  }
  func.func @transform_6(%arg0: i32, %arg1: i32) -> (i32, i32) {
    %c0_i32 = arith.constant 0 : i32
    %c0_i32_0 = arith.constant 0 : i32
    %c0_i32_1 = arith.constant 0 : i32
    return %c0_i32, %c0_i32_0 : i32, i32
  }
}

</mosaic_0001>

<bundles_post_ra>
// kernel: gnn_forward.1
= control target key start
LH: loop header
LB: loop body
LE: loop exit
PB: predicated region body
PF: predicated region fallthrough
CT: control target
= control target key end

     0   :  { %11 = vsyncpa [#allocation6], 0  ;;  %s1997_s21 = smov 0   ;;  %s1999_s22 = smov 0   ;;  %s2433_s0 = inlined_call_operand.vmem [shape: bf16[256,128], index: 0, kind: input, shape index: {}]   ;;  %s2434_s1 = inlined_call_operand.vmem [shape: bf16[256,256], index: 1, kind: input, shape index: {}]   ;;  %s2435_s2 = inlined_call_operand.vmem [shape: bf16[2,128,128], index: 2, kind: input, shape index: {}]   ;;  %s2436_s3 = inlined_call_operand.vmem [shape: f32[2,1,128], index: 3, kind: input, shape index: {}]   ;;  %s2437_s4 = inlined_call_operand.vmem [shape: bf16[128,128], index: 4, kind: input, shape index: {}]   ;;  %s2438_s5 = inlined_call_operand.vmem [shape: f32[1,128], index: 5, kind: input, shape index: {}]   ;;  %s2439_s6 = inlined_call_operand.hbm [shape: f32[1,128], index: 6, kind: output, shape index: {}]  }
   0x1   :  { %s2001_s23 = smov 0  }
   0x2 LB: > { %s1578_s24 = sadd.s32 4294967295, %s1956_s23   ;;  %s29_s25 = sadd.s32 1, %s1952_s22  ;;  %s1956_s23 = sphi %s2001_s23, %s17_s23   ;;  %s1952_s22 = sphi %s1999_s22, %s2442_s22   ;;  %s1948_s21 = sphi %s1997_s21, %s2441_s21  }
   0x3   : > { %p31_p0 = scmp.ge.s32.totalorder %s29_s25, 2  ;;  %p1581_p1 = scmp.ge.s32.totalorder %s1956_s23, 1 }
   0x4   : > { %p180_p2 = scmp.lt.s32.totalorder %s1956_s23, 3 }
   0x5   : > { %s2444_s25 = smov (%p31_p0, %s29_s25), 0 }
   0x6   : > { %p181_p3 = pnand %p1581_p1, %p180_p2 }
   0x7   : > { %p204_p4 = scmp.lt.s32.totalorder (!%p181_p3), %s1948_s21, 1  ;;  %p213_p5 = scmp.eq.s32.totalorder (!%p181_p3), %s1948_s21, 0 }
   0x8   : > { %184 = sbr.rel (%p181_p3) target bundleno = 938 (0x3aa), region = 36 }
   0xf   : > { %s2021_s26 = scalar_select %p204_p4, %s1948_s21, 1 }
  0x10   : > { %218 = sbr.rel (!%p213_p5) target bundleno = 68 (0x44), region = 40 }
  0x11   : > { %s1618_s27 = sshll.u32 %s2021_s26, 6  ;;  %s211_s30 = scalar_lea.vmem %s2436_s3, %s2021_s26 }
  0x12   : > { %s2031_s9 = scalar_lea.vmem %s2435_s2, %s1618_s27 }
  0x17   : > { %v236_v0 = vld [vmem:[%s2434_s1] sm:$0xf]  ;;  %v238_v1 = vld [vmem:[%s2434_s1 + $0x8] sm:$0xf]  ;;  %v240_v2 = vld [vmem:[%s2434_s1 + $0x4] sm:$0xf] }
  0x18   : > { %237 = vst [vmem:[#allocation2] sm:$0xf] %v236_v0  ;;  %239 = vst [vmem:[#allocation2 + $0x4] sm:$0xf] %v238_v1  ;;  %v242_v3 = vld [vmem:[%s2434_s1 + $0xc] sm:$0xff]   ;;  %v250_v6 = vld [vmem:[%s2434_s1 + $0x1c] sm:$0xff]  }
  0x19   : > { %241 = vst [vmem:[#allocation2 + $0x8] sm:$0xf] %v240_v2  ;;  %v246_v4 = vld [vmem:[%s2434_s1 + $0x18] sm:$0xf]  ;;  %v248_v5 = vld [vmem:[%s2434_s1 + $0x14] sm:$0xf] }
  0x1a   : > { %243 = vst [vmem:[#allocation2 + $0xc] sm:$0xff] %v242_v3   ;;  %247 = vst [vmem:[#allocation2 + $0x14] sm:$0xf] %v246_v4  ;;  %v254_v7 = vld [vmem:[%s2434_s1 + $0x28] sm:$0xf]  ;;  %v258_v9 = vld [vmem:[%s2434_s1 + $0x2c] sm:$0xff]  }
  0x1b   : > { %249 = vst [vmem:[#allocation2 + $0x18] sm:$0xf] %v248_v5  ;;  %v256_v8 = vld [vmem:[%s2434_s1 + $0x24] sm:$0xf]  ;;  %251 = vst [vmem:[#allocation2 + $0x1c] sm:$0xff] %v250_v6   ;;  %v266_v12 = vld [vmem:[%s2434_s1 + $0x3c] sm:$0xff]  }
  0x1c   : > { %255 = vst [vmem:[#allocation2 + $0x24] sm:$0xf] %v254_v7  ;;  %257 = vst [vmem:[#allocation2 + $0x28] sm:$0xf] %v256_v8  ;;  %v262_v10 = vld [vmem:[%s2434_s1 + $0x38] sm:$0xf] }
  0x1d   : > { %v264_v11 = vld [vmem:[%s2434_s1 + $0x34] sm:$0xf]  ;;  %259 = vst [vmem:[#allocation2 + $0x2c] sm:$0xff] %v258_v9   ;;  %263 = vst [vmem:[#allocation2 + $0x34] sm:$0xf] %v262_v10  ;;  %v274_v15 = vld [vmem:[%s2434_s1 + $0x4c] sm:$0xff]  }
  0x1e   : > { %265 = vst [vmem:[#allocation2 + $0x38] sm:$0xf] %v264_v11  ;;  %v270_v13 = vld [vmem:[%s2434_s1 + $0x48] sm:$0xf]  ;;  %v272_v14 = vld [vmem:[%s2434_s1 + $0x44] sm:$0xf] }
  0x1f   : > { %267 = vst [vmem:[#allocation2 + $0x3c] sm:$0xff] %v266_v12   ;;  %271 = vst [vmem:[#allocation2 + $0x44] sm:$0xf] %v270_v13  ;;  %v278_v16 = vld [vmem:[%s2434_s1 + $0x58] sm:$0xf]  ;;  %v282_v18 = vld [vmem:[%s2434_s1 + $0x5c] sm:$0xff]  }
  0x20   : > { %273 = vst [vmem:[#allocation2 + $0x48] sm:$0xf] %v272_v14  ;;  %v280_v17 = vld [vmem:[%s2434_s1 + $0x54] sm:$0xf]  ;;  %275 = vst [vmem:[#allocation2 + $0x4c] sm:$0xff] %v274_v15   ;;  %v290_v21 = vld [vmem:[%s2434_s1 + $0x6c] sm:$0xff]  }
  0x21   : > { %279 = vst [vmem:[#allocation2 + $0x54] sm:$0xf] %v278_v16  ;;  %281 = vst [vmem:[#allocation2 + $0x58] sm:$0xf] %v280_v17  ;;  %v286_v19 = vld [vmem:[%s2434_s1 + $0x68] sm:$0xf] }
  0x22   : > { %v288_v20 = vld [vmem:[%s2434_s1 + $0x64] sm:$0xf]  ;;  %283 = vst [vmem:[#allocation2 + $0x5c] sm:$0xff] %v282_v18   ;;  %287 = vst [vmem:[#allocation2 + $0x64] sm:$0xf] %v286_v19  ;;  %v298_v24 = vld [vmem:[%s2434_s1 + $0x7c] sm:$0xff]  }
  0x23   : > { %289 = vst [vmem:[#allocation2 + $0x68] sm:$0xf] %v288_v20  ;;  %v294_v22 = vld [vmem:[%s2434_s1 + $0x78] sm:$0xf]  ;;  %v296_v23 = vld [vmem:[%s2434_s1 + $0x74] sm:$0xf] }
  0x24   : > { %291 = vst [vmem:[#allocation2 + $0x6c] sm:$0xff] %v290_v21   ;;  %295 = vst [vmem:[#allocation2 + $0x74] sm:$0xf] %v294_v22  ;;  %v302_v25 = vld [vmem:[%s2434_s1 + $0x88] sm:$0xf]  ;;  %v306_v27 = vld [vmem:[%s2434_s1 + $0x8c] sm:$0xff]  }
  0x25   : > { %297 = vst [vmem:[#allocation2 + $0x78] sm:$0xf] %v296_v23  ;;  %v304_v26 = vld [vmem:[%s2434_s1 + $0x84] sm:$0xf]  ;;  %299 = vst [vmem:[#allocation2 + $0x7c] sm:$0xff] %v298_v24   ;;  %v314_v30 = vld [vmem:[%s2434_s1 + $0x9c] sm:$0xff]  }
  0x26   : > { %303 = vst [vmem:[#allocation2 + $0x84] sm:$0xf] %v302_v25  ;;  %305 = vst [vmem:[#allocation2 + $0x88] sm:$0xf] %v304_v26  ;;  %v310_v28 = vld [vmem:[%s2434_s1 + $0x98] sm:$0xf] }
  0x27   : > { %v312_v29 = vld [vmem:[%s2434_s1 + $0x94] sm:$0xf]  ;;  %307 = vst [vmem:[#allocation2 + $0x8c] sm:$0xff] %v306_v27   ;;  %311 = vst [vmem:[#allocation2 + $0x94] sm:$0xf] %v310_v28  ;;  %v322_v33 = vld [vmem:[%s2434_s1 + $0xac] sm:$0xff]  }
  0x28   : > { %313 = vst [vmem:[#allocation2 + $0x98] sm:$0xf] %v312_v29  ;;  %v318_v31 = vld [vmem:[%s2434_s1 + $0xa8] sm:$0xf]  ;;  %v320_v32 = vld [vmem:[%s2434_s1 + $0xa4] sm:$0xf] }
  0x29   : > { %315 = vst [vmem:[#allocation2 + $0x9c] sm:$0xff] %v314_v30   ;;  %319 = vst [vmem:[#allocation2 + $0xa4] sm:$0xf] %v318_v31  ;;  %v326_v34 = vld [vmem:[%s2434_s1 + $0xb8] sm:$0xf]  ;;  %v330_v36 = vld [vmem:[%s2434_s1 + $0xbc] sm:$0xff]  }
  0x2a   : > { %321 = vst [vmem:[#allocation2 + $0xa8] sm:$0xf] %v320_v32  ;;  %v328_v35 = vld [vmem:[%s2434_s1 + $0xb4] sm:$0xf]  ;;  %323 = vst [vmem:[#allocation2 + $0xac] sm:$0xff] %v322_v33   ;;  %v338_v39 = vld [vmem:[%s2434_s1 + $0xcc] sm:$0xff]  }
  0x2b   : > { %327 = vst [vmem:[#allocation2 + $0xb4] sm:$0xf] %v326_v34  ;;  %329 = vst [vmem:[#allocation2 + $0xb8] sm:$0xf] %v328_v35  ;;  %v334_v37 = vld [vmem:[%s2434_s1 + $0xc8] sm:$0xf] }
  0x2c   : > { %v336_v38 = vld [vmem:[%s2434_s1 + $0xc4] sm:$0xf]  ;;  %331 = vst [vmem:[#allocation2 + $0xbc] sm:$0xff] %v330_v36   ;;  %335 = vst [vmem:[#allocation2 + $0xc4] sm:$0xf] %v334_v37  ;;  %v346_v42 = vld [vmem:[%s2434_s1 + $0xdc] sm:$0xff]  }
  0x2d   : > { %337 = vst [vmem:[#allocation2 + $0xc8] sm:$0xf] %v336_v38  ;;  %v342_v40 = vld [vmem:[%s2434_s1 + $0xd8] sm:$0xf]  ;;  %v344_v41 = vld [vmem:[%s2434_s1 + $0xd4] sm:$0xf] }
  0x2e   : > { %339 = vst [vmem:[#allocation2 + $0xcc] sm:$0xff] %v338_v39   ;;  %343 = vst [vmem:[#allocation2 + $0xd4] sm:$0xf] %v342_v40  ;;  %v350_v43 = vld [vmem:[%s2434_s1 + $0xe8] sm:$0xf]  ;;  %v354_v45 = vld [vmem:[%s2434_s1 + $0xec] sm:$0xff]  }
  0x2f   : > { %345 = vst [vmem:[#allocation2 + $0xd8] sm:$0xf] %v344_v41  ;;  %v352_v44 = vld [vmem:[%s2434_s1 + $0xe4] sm:$0xf]  ;;  %347 = vst [vmem:[#allocation2 + $0xdc] sm:$0xff] %v346_v42  }
  0x30   : > { %351 = vst [vmem:[#allocation2 + $0xe4] sm:$0xf] %v350_v43  ;;  %353 = vst [vmem:[#allocation2 + $0xe8] sm:$0xf] %v352_v44  ;;  %v358_v46 = vld [vmem:[%s2434_s1 + $0xf8] sm:$0xf] }
  0x31   : > { %v360_v47 = vld [vmem:[%s2434_s1 + $0xf4] sm:$0xf]  ;;  %355 = vst [vmem:[#allocation2 + $0xec] sm:$0xff] %v354_v45   ;;  %359 = vst [vmem:[#allocation2 + $0xf4] sm:$0xf] %v358_v46 }
  0x32   : > { %361 = vst [vmem:[#allocation2 + $0xf8] sm:$0xf] %v360_v47  ;;  %v362_v48 = vld [vmem:[%s2434_s1 + $0xfc] sm:$0xf] }
  0x33   : > { %363 = vst [vmem:[#allocation2 + $0xfc] sm:$0xf] %v362_v48 }
  0x34   : > { %522 = vsyncadd [#allocation7], 4096 }
  0x35   : > { %1938 = dma.done.wait [#allocation7], 4096 }
  0x36   : > { %1939 = vsyncadd [#allocation7], 4294963200 }
  0x37   : > { %v560_v49 = vld [vmem:[%s2433_s0] sm:$0xff]  ;;  %v562_v50 = vld [vmem:[%s2433_s0 + $0x8] sm:$0xff]  ;;  %v564_v51 = vld [vmem:[%s2433_s0 + $0x10] sm:$0xff] }
  0x38   : > { %561 = vst [vmem:[#allocation3 + $0x80] sm:$0xff] %v560_v49  ;;  %563 = vst [vmem:[#allocation3 + $0x88] sm:$0xff] %v562_v50  ;;  %v566_v52 = vld [vmem:[%s2433_s0 + $0x18] sm:$0xff]  ;;  %v568_v53 = vld [vmem:[%s2433_s0 + $0x20] sm:$0xff] }
  0x39   : > { %565 = vst [vmem:[#allocation3 + $0x90] sm:$0xff] %v564_v51  ;;  %v570_v54 = vld [vmem:[%s2433_s0 + $0x28] sm:$0xff]  ;;  %567 = vst [vmem:[#allocation3 + $0x98] sm:$0xff] %v566_v52  ;;  %v572_v55 = vld [vmem:[%s2433_s0 + $0x30] sm:$0xff] }
  0x3a   : > { %569 = vst [vmem:[#allocation3 + $0xa0] sm:$0xff] %v568_v53  ;;  %571 = vst [vmem:[#allocation3 + $0xa8] sm:$0xff] %v570_v54  ;;  %v574_v56 = vld [vmem:[%s2433_s0 + $0x38] sm:$0xff]  ;;  %v576_v57 = vld [vmem:[%s2433_s0 + $0x40] sm:$0xff] }
  0x3b   : > { %573 = vst [vmem:[#allocation3 + $0xb0] sm:$0xff] %v572_v55  ;;  %575 = vst [vmem:[#allocation3 + $0xb8] sm:$0xff] %v574_v56  ;;  %v578_v58 = vld [vmem:[%s2433_s0 + $0x48] sm:$0xff]  ;;  %v580_v59 = vld [vmem:[%s2433_s0 + $0x50] sm:$0xff] }
  0x3c   : > { %577 = vst [vmem:[#allocation3 + $0xc0] sm:$0xff] %v576_v57  ;;  %v582_v60 = vld [vmem:[%s2433_s0 + $0x58] sm:$0xff]  ;;  %579 = vst [vmem:[#allocation3 + $0xc8] sm:$0xff] %v578_v58  ;;  %v584_v61 = vld [vmem:[%s2433_s0 + $0x60] sm:$0xff] }
  0x3d   : > { %581 = vst [vmem:[#allocation3 + $0xd0] sm:$0xff] %v580_v59  ;;  %583 = vst [vmem:[#allocation3 + $0xd8] sm:$0xff] %v582_v60  ;;  %v586_v62 = vld [vmem:[%s2433_s0 + $0x68] sm:$0xff]  ;;  %v588_v63 = vld [vmem:[%s2433_s0 + $0x70] sm:$0xff] }
  0x3e   : > { %585 = vst [vmem:[#allocation3 + $0xe0] sm:$0xff] %v584_v61  ;;  %587 = vst [vmem:[#allocation3 + $0xe8] sm:$0xff] %v586_v62  ;;  %v590_v0 = vld [vmem:[%s2433_s0 + $0x78] sm:$0xff] }
  0x3f   : > { %589 = vst [vmem:[#allocation3 + $0xf0] sm:$0xff] %v588_v63  ;;  %591 = vst [vmem:[#allocation3 + $0xf8] sm:$0xff] %v590_v0 }
  0x40   : > { %599 = vsyncadd [#allocation9], 2048 }
  0x41   : > { %1940 = dma.done.wait [#allocation9], 2048 }
  0x42   : > { %1941 = vsyncadd [#allocation9], 4294965248  ;;  %v1958_v1 = vmov 0.0  }
  0x43   : > { %604 = vst [vmem:[#allocation4] sm:$0x1] %v1958_v1 }
  0x44 PF: > { %s605_s12 = sadd.s32 1, %s1948_s21  ;;  %v660_v2 = vld [vmem:[#allocation2 + $0x8] sm:$0xff]  ;;  %v1884_v20 = vld [vmem:[%s2031_s9] sm:$0xff]   ;;  %v662_v23 = vld [vmem:[#allocation2 + $0x18] sm:$0xff]  ;;  %p1168_p8 = scmp.eq.s32.totalorder %s1948_s21, 1 }
  0x45   : > { %p606_p6 = scmp.lt.s32.totalorder %s605_s12, 0  ;;  %s607_s13 = ssub.s32 0, %s605_s12  ;;  %723 = vmatprep.mubr.bf16.mxu0 %v660_v2  ;;  %v684_v3 = vld [vmem:[#allocation2 + $0xc8] sm:$0xff]  ;;  %v659_v21 = vld [vmem:[#allocation2] sm:$0xff]  ;;  %v686_v24 = vld [vmem:[#allocation2 + $0xd8] sm:$0xff] }
  0x46   : > { %s1585_s14 = smin.u32 %s607_s13, %s605_s12  ;;  %819 = vmatprep.mubr.bf16.mxu1 %v684_v3  ;;  %v683_v22 = vld [vmem:[#allocation2 + $0xc0] sm:$0xff]  ;;  %v1885_v25 = vld [vmem:[%s2031_s9 + $0x8] sm:$0xff]   ;;  %v1886_v26 = vld [vmem:[%s2031_s9 + $0x10] sm:$0xff]   ;;  %p619_p9 = scmp.lt.s32.totalorder %s1948_s21, 0 }
  0x47   : > { %s609_s15 = sand.u32 1, %s1585_s14   ;;  %v661_v27 = vld [vmem:[#allocation2 + $0x10] sm:$0xff]  ;;  %v664_v29 = vld [vmem:[#allocation2 + $0x28] sm:$0xff]  ;;  %v1887_v31 = vld [vmem:[%s2031_s9 + $0x18] sm:$0xff]   ;;  %p1604_p11 = scmp.ne.s32.totalorder %s1948_s21, 1 }
  0x48   : > { %s610_s16 = ssub.s32 0, %s609_s15  ;;  %v685_v28 = vld [vmem:[#allocation2 + $0xd0] sm:$0xff]  ;;  %v688_v30 = vld [vmem:[#allocation2 + $0xe8] sm:$0xff]  ;;  %v663_v32 = vld [vmem:[#allocation2 + $0x20] sm:$0xff] }
  0x49   : > { %s2446_s16 = smov (!%p606_p6, %s610_s16), %s609_s15  ;;  %v687_v33 = vld [vmem:[#allocation2 + $0xe0] sm:$0xff]  ;;  %v666_v34 = vld [vmem:[#allocation2 + $0x38] sm:$0xff]  ;;  %v665_v36 = vld [vmem:[#allocation2 + $0x30] sm:$0xff] }
  0x4a   : > { %p1587_p7 = scmp.lt.s32.totalorder %s2446_s16, 0  ;;  %s616_s17 = sadd.s32 2, %s2446_s16  ;;  %v690_v35 = vld [vmem:[#allocation2 + $0xf8] sm:$0xff]  ;;  %v689_v37 = vld [vmem:[#allocation2 + $0xf0] sm:$0xff]  ;;  %v668_v38 = vld [vmem:[#allocation2 + $0x48] sm:$0xff] }
  0x4b   : > { %v667_v39 = vld [vmem:[#allocation2 + $0x40] sm:$0xff]  ;;  %v670_v40 = vld [vmem:[#allocation2 + $0x58] sm:$0xff]  ;;  %v669_v41 = vld [vmem:[#allocation2 + $0x50] sm:$0xff] }
  0x4c   : > { %s2448_s17 = smov (!%p1587_p7, %s616_s17), %s2446_s16  ;;  %v672_v42 = vld [vmem:[#allocation2 + $0x68] sm:$0xff]  ;;  %v671_v43 = vld [vmem:[#allocation2 + $0x60] sm:$0xff]  ;;  %v674_v44 = vld [vmem:[#allocation2 + $0x78] sm:$0xff] }
  0x4d   : > { %s1588_s18 = sshll.u32 %s2448_s17, 8  ;;  %v673_v45 = vld [vmem:[#allocation2 + $0x70] sm:$0xff]  ;;  %v676_v46 = vld [vmem:[#allocation2 + $0x88] sm:$0xff]  ;;  %v675_v47 = vld [vmem:[#allocation2 + $0x80] sm:$0xff] }
  0x4e   : > { %s634_s19 = sshra.s32 %s1588_s18, 4  ;;  %v678_v48 = vld [vmem:[#allocation2 + $0x98] sm:$0xff]  ;;  %v677_v49 = vld [vmem:[#allocation2 + $0x90] sm:$0xff]  ;;  %v680_v50 = vld [vmem:[#allocation2 + $0xa8] sm:$0xff] }
  0x4f   : > { %s1593_s20 = sshll.u32 %s634_s19, 3  ;;  %v679_v51 = vld [vmem:[#allocation2 + $0xa0] sm:$0xff]  ;;  %v682_v52 = vld [vmem:[#allocation2 + $0xb8] sm:$0xff]  ;;  %v681_v54 = vld [vmem:[#allocation2 + $0xb0] sm:$0xff] }
  0x50   : > { %s2229_s27 = scalar_lea.vmem [#allocation3], %s1593_s20  ;;  %v1888_v53 = vld [vmem:[%s2031_s9 + $0x20] sm:$0xff]   ;;  %v1889_v55 = vld [vmem:[%s2031_s9 + $0x28] sm:$0xff]   ;;  %v1890_v56 = vld [vmem:[%s2031_s9 + $0x30] sm:$0xff]  }
  0x51   : > { %v646_v4 = vld [vmem:[%s2229_s27 + $0x40] sm:$0xff]  ;;  %v647_v6 = vld [vmem:[%s2229_s27 + $0x48] sm:$0xff]  ;;  %v648_v8 = vld [vmem:[%s2229_s27 + $0x50] sm:$0xff] }
  0x52   : > { %v638_v5 = vld [vmem:[%s2229_s27] sm:$0xff]  ;;  %1621 = vmatprep.subr.bf16.mxu0 %v646_v4  ;;  %1834 = vmatprep.subr.bf16.mxu1 %v646_v4  ;;  %v639_v7 = vld [vmem:[%s2229_s27 + $0x8] sm:$0xff]  ;;  %v640_v9 = vld [vmem:[%s2229_s27 + $0x10] sm:$0xff] }
  0x53   : > { %1622 = vmatpush3.bf16.msra.mxu0 %v638_v5  ;;  %1842 = vmatpush3.bf16.msra.mxu1 %v638_v5  ;;  %v649_v10 = vld [vmem:[%s2229_s27 + $0x58] sm:$0xff]  ;;  %v650_v12 = vld [vmem:[%s2229_s27 + $0x60] sm:$0xff]  ;;  %v651_v14 = vld [vmem:[%s2229_s27 + $0x68] sm:$0xff] }
  0x54   : > { %1623 = vmatprep.subr.bf16.mxu0 %v647_v6  ;;  %1835 = vmatprep.subr.bf16.mxu1 %v647_v6  ;;  %v641_v11 = vld [vmem:[%s2229_s27 + $0x18] sm:$0xff]  ;;  %v642_v13 = vld [vmem:[%s2229_s27 + $0x20] sm:$0xff]  ;;  %v643_v15 = vld [vmem:[%s2229_s27 + $0x28] sm:$0xff] }
  0x55   : > { %v652_v16 = vld [vmem:[%s2229_s27 + $0x70] sm:$0xff]  ;;  %v653_v18 = vld [vmem:[%s2229_s27 + $0x78] sm:$0xff] }
  0x56   : > { %v644_v17 = vld [vmem:[%s2229_s27 + $0x30] sm:$0xff]  ;;  %v645_v19 = vld [vmem:[%s2229_s27 + $0x38] sm:$0xff] }
  0x57   : > { %1624 = vmatpush3.bf16.msra.mxu0 %v639_v7  ;;  %1843 = vmatpush3.bf16.msra.mxu1 %v639_v7  ;;  %v1891_v57 = vld [vmem:[%s2031_s9 + $0x38] sm:$0xff]   ;;  %s620_s9 = ssub.s32 0, %s1948_s21 }
  0x58   : > { %1625 = vmatprep.subr.bf16.mxu0 %v648_v8  ;;  %1836 = vmatprep.subr.bf16.mxu1 %v648_v8  ;;  %s1589_s28 = smin.u32 %s1948_s21, %s620_s9 }
  0x59   : > { %s622_s29 = sand.u32 1, %s1589_s28  }
  0x5a   : > { %s623_s7 = ssub.s32 0, %s622_s29 }
  0x5b   : > { %1626 = vmatpush3.bf16.msra.mxu0 %v640_v9  ;;  %1844 = vmatpush3.bf16.msra.mxu1 %v640_v9  ;;  %s2450_s7 = smov (!%p619_p9, %s623_s7), %s622_s29 }
  0x5c   : > { %1627 = vmatprep.subr.bf16.mxu0 %v649_v10  ;;  %1837 = vmatprep.subr.bf16.mxu1 %v649_v10  ;;  %p1591_p10 = scmp.lt.s32.totalorder %s2450_s7, 0  ;;  %s629_s8 = sadd.s32 2, %s2450_s7 }
  0x5e   : > { %s2452_s8 = smov (!%p1591_p10, %s629_s8), %s2450_s7 }
  0x5f   : > { %1628 = vmatpush3.bf16.msra.mxu0 %v641_v11  ;;  %1845 = vmatpush3.bf16.msra.mxu1 %v641_v11  ;;  %s1592_s10 = sshll.u32 %s2452_s8, 8 }
  0x60   : > { %1629 = vmatprep.subr.bf16.mxu0 %v650_v12  ;;  %1838 = vmatprep.subr.bf16.mxu1 %v650_v12  ;;  %s1148_s13 = sshra.s32 %s1592_s10, 4 }
  0x61   : > { %s1603_s14 = sshll.u32 %s1148_s13, 3 }
  0x62   : > { %s2316_s26 = scalar_lea.vmem [#allocation3], %s1603_s14 }
  0x63   : > { %1630 = vmatpush3.bf16.msra.mxu0 %v642_v13  ;;  %1846 = vmatpush3.bf16.msra.mxu1 %v642_v13 }
  0x64   : > { %1631 = vmatprep.subr.bf16.mxu0 %v651_v14  ;;  %1839 = vmatprep.subr.bf16.mxu1 %v651_v14 }
  0x67   : > { %1632 = vmatpush3.bf16.msra.mxu0 %v643_v15  ;;  %1847 = vmatpush3.bf16.msra.mxu1 %v643_v15 }
  0x68   : > { %1633 = vmatprep.subr.bf16.mxu0 %v652_v16  ;;  %1840 = vmatprep.subr.bf16.mxu1 %v652_v16 }
  0x6b   : > { %1634 = vmatpush3.bf16.msra.mxu0 %v644_v17  ;;  %1848 = vmatpush3.bf16.msra.mxu1 %v644_v17 }
  0x6c   : > { %1635 = vmatprep.subr.bf16.mxu0 %v653_v18  ;;  %1841 = vmatprep.subr.bf16.mxu1 %v653_v18 }
  0x6f   : > { %1636 = vmatpush3.bf16.msra.mxu0 %v645_v19  ;;  %1849 = vmatpush3.bf16.msra.mxu1 %v645_v19 }
  0x70   : > { %1766 = vmatprep.subr.bf16.mxu1 %v1884_v20 }
  0x72   : > { %724 = vmatmul.mubr.bf16.vlgmr.msra.gmra.mrb[0].mxu0 %v659_v21  ;;  %820 = vmatmul.mubr.bf16.vlgmr.msra.gmra.mrb[0].mxu1 %v683_v22 }
  0x73   : > { %731 = vmatprep.mubr.bf16.mxu0 %v662_v23  ;;  %827 = vmatprep.mubr.bf16.mxu1 %v686_v24 }
  0x74   : > { %1767 = vmatpush3.bf16.msra.mxu1 %v1884_v20 }
  0x75   : > { %1768 = vmatprep.subr.bf16.mxu1 %v1885_v25 }
  0x78   : > { %1769 = vmatpush3.bf16.msra.mxu1 %v1885_v25 }
  0x79   : > { %1770 = vmatprep.subr.bf16.mxu1 %v1886_v26 }
  0x7a   : > { %732 = vmatmul.mubr.bf16.gmra.mrb[4].mxu0 %v661_v27  ;;  %828 = vmatmul.mubr.bf16.gmra.mrb[4].mxu1 %v685_v28 }
  0x7b   : > { %739 = vmatprep.mubr.bf16.mxu0 %v664_v29  ;;  %835 = vmatprep.mubr.bf16.mxu1 %v688_v30 }
  0x7c   : > { %1771 = vmatpush3.bf16.msra.mxu1 %v1886_v26 }
  0x7d   : > { %1772 = vmatprep.subr.bf16.mxu1 %v1887_v31 }
  0x80   : > { %1773 = vmatpush3.bf16.msra.mxu1 %v1887_v31 }
  0x81   : > { %1774 = vmatprep.subr.bf16.mxu1 %v1888_v53 }
  0x82   : > { %740 = vmatmul.mubr.bf16.gmra.mrb[8].mxu0 %v663_v32  ;;  %836 = vmatmul.mubr.bf16.gmra.mrb[8].mxu1 %v687_v33 }
  0x83   : > { %747 = vmatprep.mubr.bf16.mxu0 %v666_v34  ;;  %843 = vmatprep.mubr.bf16.mxu1 %v690_v35 }
  0x84   : > { %1775 = vmatpush3.bf16.msra.mxu1 %v1888_v53 }
  0x85   : > { %1776 = vmatprep.subr.bf16.mxu1 %v1889_v55 }
  0x88   : > { %1777 = vmatpush3.bf16.msra.mxu1 %v1889_v55 }
  0x89   : > { %1778 = vmatprep.subr.bf16.mxu1 %v1890_v56 }
  0x8a   : > { %748 = vmatmul.mubr.bf16.gmra.mrb[12].mxu0 %v665_v36  ;;  %844 = vmatmul.mubr.bf16.gmra.mrb[12].mxu1 %v689_v37 }
  0x8b   : > { %755 = vmatprep.mubr.bf16.mxu0 %v668_v38 }
  0x8c   : > { %1779 = vmatpush3.bf16.msra.mxu1 %v1890_v56 }
  0x8d   : > { %1780 = vmatprep.subr.bf16.mxu1 %v1891_v57 }
  0x90   : > { %1781 = vmatpush3.bf16.msra.mxu1 %v1891_v57 }
  0x92   : > { %756 = vmatmul.mubr.bf16.gmra.mrb[16].mxu0 %v667_v39 }
  0x93   : > { %763 = vmatprep.mubr.bf16.mxu0 %v670_v40 }
  0x9a   : > { %764 = vmatmul.mubr.bf16.gmra.mrb[20].mxu0 %v669_v41 }
  0x9b   : > { %771 = vmatprep.mubr.bf16.mxu0 %v672_v42 }
  0xa2   : > { %772 = vmatmul.mubr.bf16.gmra.mrb[24].mxu0 %v671_v43 }
  0xa3   : > { %779 = vmatprep.mubr.bf16.mxu0 %v674_v44 }
  0xaa   : > { %780 = vmatmul.mubr.bf16.gmra.mrb[28].mxu0 %v673_v45 }
  0xab   : > { %787 = vmatprep.mubr.bf16.mxu0 %v676_v46 }
  0xb2   : > { %788 = vmatmul.mubr.bf16.gmra.mrb[32].mxu0 %v675_v47 }
  0xb3   : > { %795 = vmatprep.mubr.bf16.mxu0 %v678_v48 }
  0xba   : > { %796 = vmatmul.mubr.bf16.gmra.mrb[36].mxu0 %v677_v49 }
  0xbb   : > { %803 = vmatprep.mubr.bf16.mxu0 %v680_v50 }
  0xc2   : > { %804 = vmatmul.mubr.bf16.gmra.mrb[40].mxu0 %v679_v51 }
  0xc3   : > { %811 = vmatprep.mubr.bf16.mxu0 %v682_v52 }
  0xca   : > { %812 = vmatmul.mubr.bf16.gmra.mrb[44].mxu0 %v681_v54 }
 0x145   : > { %v1637_v58 = vpop.f32.mrb[0].mxu0  ;;  %v1709_v59 = vpop.f32.mrb[0].mxu1 }
 0x146   : > { %v1638_v60 = vpop.f32.mrb[1].mxu0  ;;  %v1710_v61 = vpop.f32.mrb[1].mxu1 }
 0x147   : > { %v1639_v62 = vadd.f32 %v1638_v60, %v1637_v58  ;;  %v1640_v63 = vpop.f32.mrb[2].mxu0  ;;  %v2255_v0 = vadd.f32 %v1710_v61, %v1709_v59  ;;  %v1712_v1 = vpop.f32.mrb[2].mxu1 }
 0x148   : > { %v1641_v2 = vpop.f32.mrb[3].mxu0  ;;  %v1713_v3 = vpop.f32.mrb[3].mxu1 }
 0x149   : > { %v1642_v4 = vadd.f32 %v1641_v2, %v1640_v63  ;;  %v2257_v5 = vadd.f32 %v1713_v3, %v1712_v1 }
 0x14b   : > { %v852_v6 = vpack.c.bf16 %v1642_v4, %v1639_v62  ;;  %v864_v7 = vpack.c.bf16 %v2257_v5, %v2255_v0  ;;  %v2300_v0 = vld [vmem:[%s211_s30] ss:$0 sm:$0xff] }
 0x14d   : > { %v1643_v8 = vpop.f32.mrb[4].mxu0  ;;  %1782 = vmatprep.mubr.bf16.mxu1 %v852_v6  ;;  %v1715_v9 = vpop.f32.mrb[4].mxu1 }
 0x14e   : > { %v1644_v10 = vpop.f32.mrb[5].mxu0  ;;  %v1716_v11 = vpop.f32.mrb[5].mxu1 }
 0x14f   : > { %v1645_v12 = vadd.f32 %v1644_v10, %v1643_v8  ;;  %v1646_v13 = vpop.f32.mrb[6].mxu0  ;;  %v2261_v14 = vadd.f32 %v1716_v11, %v1715_v9  ;;  %v1718_v15 = vpop.f32.mrb[6].mxu1 }
 0x150   : > { %v1647_v16 = vpop.f32.mrb[7].mxu0  ;;  %v1719_v17 = vpop.f32.mrb[7].mxu1 }
 0x151   : > { %v1648_v18 = vadd.f32 %v1647_v16, %v1646_v13  ;;  %v2263_v19 = vadd.f32 %v1719_v17, %v1718_v15 }
 0x153   : > { %v853_v20 = vpack.c.bf16 %v1648_v18, %v1645_v12  ;;  %v865_v21 = vpack.c.bf16 %v2263_v19, %v2261_v14 }
 0x155   : > { %v1649_v22 = vpop.f32.mrb[8].mxu0  ;;  %1783 = vmatmul.mubr.bf16.vlgmr.msra.gmra.mrb[16].mxu1 %v853_v20  ;;  %v1721_v23 = vpop.f32.mrb[8].mxu1 }
 0x156   : > { %v1650_v24 = vpop.f32.mrb[9].mxu0  ;;  %v1722_v25 = vpop.f32.mrb[9].mxu1 }
 0x157   : > { %v1651_v26 = vadd.f32 %v1650_v24, %v1649_v22  ;;  %v1652_v27 = vpop.f32.mrb[10].mxu0  ;;  %v2267_v28 = vadd.f32 %v1722_v25, %v1721_v23  ;;  %v1724_v29 = vpop.f32.mrb[10].mxu1 }
 0x158   : > { %v1653_v30 = vpop.f32.mrb[11].mxu0  ;;  %v1725_v31 = vpop.f32.mrb[11].mxu1 }
 0x159   : > { %v1654_v32 = vadd.f32 %v1653_v30, %v1652_v27  ;;  %v2269_v33 = vadd.f32 %v1725_v31, %v1724_v29 }
 0x15b   : > { %v854_v34 = vpack.c.bf16 %v1654_v32, %v1651_v26  ;;  %v866_v35 = vpack.c.bf16 %v2269_v33, %v2267_v28 }
 0x15d   : > { %v1655_v36 = vpop.f32.mrb[12].mxu0  ;;  %1786 = vmatprep.mubr.bf16.mxu1 %v854_v34  ;;  %v1727_v37 = vpop.f32.mrb[12].mxu1 }
 0x15e   : > { %v1656_v38 = vpop.f32.mrb[13].mxu0  ;;  %v1728_v39 = vpop.f32.mrb[13].mxu1 }
 0x15f   : > { %v1657_v40 = vadd.f32 %v1656_v38, %v1655_v36  ;;  %v1658_v41 = vpop.f32.mrb[14].mxu0  ;;  %v2273_v42 = vadd.f32 %v1728_v39, %v1727_v37  ;;  %v1730_v43 = vpop.f32.mrb[14].mxu1 }
 0x160   : > { %v1659_v44 = vpop.f32.mrb[15].mxu0  ;;  %v1731_v45 = vpop.f32.mrb[15].mxu1 }
 0x161   : > { %v1660_v46 = vadd.f32 %v1659_v44, %v1658_v41  ;;  %v2275_v47 = vadd.f32 %v1731_v45, %v1730_v43 }
 0x163   : > { %v855_v48 = vpack.c.bf16 %v1660_v46, %v1657_v40  ;;  %v867_v49 = vpack.c.bf16 %v2275_v47, %v2273_v42 }
 0x165   : > { %v1661_v50 = vpop.f32.mrb[16].mxu0  ;;  %1787 = vmatmul.mubr.bf16.gmra.mrb[20].mxu1 %v855_v48 }
 0x166   : > { %v1662_v51 = vpop.f32.mrb[17].mxu0 }
 0x167   : > { %v1663_v52 = vadd.f32 %v1662_v51, %v1661_v50  ;;  %v1664_v53 = vpop.f32.mrb[18].mxu0 }
 0x168   : > { %v1665_v54 = vpop.f32.mrb[19].mxu0 }
 0x169   : > { %v1666_v55 = vadd.f32 %v1665_v54, %v1664_v53 }
 0x16b   : > { %v856_v56 = vpack.c.bf16 %v1666_v55, %v1663_v52 }
 0x16d   : > { %v1667_v57 = vpop.f32.mrb[20].mxu0  ;;  %1790 = vmatprep.mubr.bf16.mxu1 %v856_v56 }
 0x16e   : > { %v1668_v58 = vpop.f32.mrb[21].mxu0 }
 0x16f   : > { %v1669_v59 = vadd.f32 %v1668_v58, %v1667_v57  ;;  %v1670_v60 = vpop.f32.mrb[22].mxu0 }
 0x170   : > { %v1671_v61 = vpop.f32.mrb[23].mxu0 }
 0x171   : > { %v1672_v62 = vadd.f32 %v1671_v61, %v1670_v60 }
 0x173   : > { %v857_v63 = vpack.c.bf16 %v1672_v62, %v1669_v59 }
 0x175   : > { %v1673_v1 = vpop.f32.mrb[24].mxu0  ;;  %1791 = vmatmul.mubr.bf16.gmra.mrb[24].mxu1 %v857_v63 }
 0x176   : > { %v1674_v2 = vpop.f32.mrb[25].mxu0 }
 0x177   : > { %v1675_v3 = vadd.f32 %v1674_v2, %v1673_v1  ;;  %v1676_v4 = vpop.f32.mrb[26].mxu0 }
 0x178   : > { %v1677_v6 = vpop.f32.mrb[27].mxu0 }
 0x179   : > { %v1678_v8 = vadd.f32 %v1677_v6, %v1676_v4 }
 0x17b   : > { %v858_v9 = vpack.c.bf16 %v1678_v8, %v1675_v3 }
 0x17d   : > { %v1679_v10 = vpop.f32.mrb[28].mxu0  ;;  %1794 = vmatprep.mubr.bf16.mxu1 %v858_v9 }
 0x17e   : > { %v1680_v11 = vpop.f32.mrb[29].mxu0 }
 0x17f   : > { %v1681_v12 = vadd.f32 %v1680_v11, %v1679_v10  ;;  %v1682_v13 = vpop.f32.mrb[30].mxu0 }
 0x180   : > { %v1683_v15 = vpop.f32.mrb[31].mxu0 }
 0x181   : > { %v1684_v16 = vadd.f32 %v1683_v15, %v1682_v13 }
 0x183   : > { %v859_v17 = vpack.c.bf16 %v1684_v16, %v1681_v12 }
 0x185   : > { %v1685_v18 = vpop.f32.mrb[32].mxu0  ;;  %1795 = vmatmul.mubr.bf16.gmra.mrb[28].mxu1 %v859_v17 }
 0x186   : > { %v1686_v20 = vpop.f32.mrb[33].mxu0 }
 0x187   : > { %v1687_v22 = vadd.f32 %v1686_v20, %v1685_v18  ;;  %v1688_v23 = vpop.f32.mrb[34].mxu0 }
 0x188   : > { %v1689_v24 = vpop.f32.mrb[35].mxu0 }
 0x189   : > { %v1690_v25 = vadd.f32 %v1689_v24, %v1688_v23 }
 0x18b   : > { %v860_v26 = vpack.c.bf16 %v1690_v25, %v1687_v22 }
 0x18d   : > { %v1691_v27 = vpop.f32.mrb[36].mxu0  ;;  %1798 = vmatprep.mubr.bf16.mxu1 %v860_v26 }
 0x18e   : > { %v1692_v29 = vpop.f32.mrb[37].mxu0 }
 0x18f   : > { %v1693_v30 = vadd.f32 %v1692_v29, %v1691_v27  ;;  %v1694_v31 = vpop.f32.mrb[38].mxu0 }
 0x190   : > { %v1695_v32 = vpop.f32.mrb[39].mxu0 }
 0x191   : > { %v1696_v34 = vadd.f32 %v1695_v32, %v1694_v31 }
 0x193   : > { %v861_v36 = vpack.c.bf16 %v1696_v34, %v1693_v30 }
 0x195   : > { %v1697_v37 = vpop.f32.mrb[40].mxu0  ;;  %1799 = vmatmul.mubr.bf16.gmra.mrb[32].mxu1 %v861_v36 }
 0x196   : > { %v1698_v38 = vpop.f32.mrb[41].mxu0 }
 0x197   : > { %v1699_v39 = vadd.f32 %v1698_v38, %v1697_v37  ;;  %v1700_v40 = vpop.f32.mrb[42].mxu0 }
 0x198   : > { %v1701_v41 = vpop.f32.mrb[43].mxu0 }
 0x199   : > { %v1702_v43 = vadd.f32 %v1701_v41, %v1700_v40 }
 0x19b   : > { %v862_v44 = vpack.c.bf16 %v1702_v43, %v1699_v39 }
 0x19d   : > { %v1703_v45 = vpop.f32.mrb[44].mxu0  ;;  %1802 = vmatprep.mubr.bf16.mxu1 %v862_v44 }
 0x19e   : > { %v1704_v46 = vpop.f32.mrb[45].mxu0 }
 0x19f   : > { %v1705_v48 = vadd.f32 %v1704_v46, %v1703_v45  ;;  %v1706_v50 = vpop.f32.mrb[46].mxu0 }
 0x1a0   : > { %v1707_v51 = vpop.f32.mrb[47].mxu0 }
 0x1a1   : > { %v1708_v52 = vadd.f32 %v1707_v51, %v1706_v50 }
 0x1a3   : > { %v863_v53 = vpack.c.bf16 %v1708_v52, %v1705_v48 }
 0x1a5   : > { %1803 = vmatmul.mubr.bf16.gmra.mrb[36].mxu1 %v863_v53 }
 0x1a6   : > { %1806 = vmatprep.mubr.bf16.mxu1 %v864_v7 }
 0x1ad   : > { %1807 = vmatmul.mubr.bf16.gmra.mrb[40].mxu1 %v865_v21 }
 0x1ae   : > { %1810 = vmatprep.mubr.bf16.mxu1 %v866_v35 }
 0x1b5   : > { %1811 = vmatmul.mubr.bf16.gmra.mrb[44].mxu1 %v867_v49 }
 0x228   : > { %v1784_v5 = vpop.f32.mrb[16].mxu1 }
 0x229   : > { %v982_v7 = vadd.f32 %v1784_v5, %v2300_v0  ;;  %v973_v14 = vpop.f32.mrb[17].mxu1 }
 0x22a   : > { %v2304_v19 = vadd.f32 %v2300_v0, %v973_v14  ;;  %v1785_v21 = vpop.f32.mrb[18].mxu1 }
 0x22b   : > { %v985_v28 = vadd.f32 %v1785_v21, %v2300_v0  ;;  %v976_v33 = vpop.f32.mrb[19].mxu1  ;;  %v1102_v42 = vmax.f32 %v982_v7, 0.0 }
 0x22c   : > { %v2308_v35 = vadd.f32 %v2300_v0, %v976_v33  ;;  %v1100_v49 = vmax.f32 %v2304_v19, 0.0 }
 0x22d   : > { %v1103_v47 = vmax.f32 %v985_v28, 0.0 }
 0x22e   : > { %v1101_v54 = vmax.f32 %v2308_v35, 0.0 }
 0x22f   : > { %v1133_v55 = vpack.c.bf16 %v1103_v47, %v1102_v42 }
 0x230   : > { %v1132_v56 = vpack.c.bf16 %v1101_v54, %v1100_v49 }
 0x231   : > { %1153 = vst [vmem:[%s2316_s26 + $0x8] sm:$0xff] %v1133_v55 }
 0x232   : > { %1152 = vst [vmem:[%s2316_s26] sm:$0xff] %v1132_v56 }
 0x238   : > { %v1788_v57 = vpop.f32.mrb[20].mxu1 }
 0x239   : > { %v998_v58 = vadd.f32 %v1788_v57, %v2300_v0  ;;  %v989_v59 = vpop.f32.mrb[21].mxu1 }
 0x23a   : > { %v990_v60 = vadd.f32 %v2300_v0, %v989_v59  ;;  %v1789_v61 = vpop.f32.mrb[22].mxu1 }
 0x23b   : > { %v1001_v62 = vadd.f32 %v1789_v61, %v2300_v0  ;;  %v992_v63 = vpop.f32.mrb[23].mxu1  ;;  %v1106_v2 = vmax.f32 %v998_v58, 0.0 }
 0x23c   : > { %v993_v1 = vadd.f32 %v2300_v0, %v992_v63  ;;  %v1104_v4 = vmax.f32 %v990_v60, 0.0 }
 0x23d   : > { %v1107_v3 = vmax.f32 %v1001_v62, 0.0 }
 0x23e   : > { %v1105_v6 = vmax.f32 %v993_v1, 0.0 }
 0x23f   : > { %v1135_v8 = vpack.c.bf16 %v1107_v3, %v1106_v2 }
 0x240   : > { %v1134_v9 = vpack.c.bf16 %v1105_v6, %v1104_v4 }
 0x241   : > { %1155 = vst [vmem:[%s2316_s26 + $0x18] sm:$0xff] %v1135_v8 }
 0x242   : > { %1154 = vst [vmem:[%s2316_s26 + $0x10] sm:$0xff] %v1134_v9 }
 0x248   : > { %v1792_v10 = vpop.f32.mrb[24].mxu1 }
 0x249   : > { %v1014_v11 = vadd.f32 %v1792_v10, %v2300_v0  ;;  %v1005_v12 = vpop.f32.mrb[25].mxu1 }
 0x24a   : > { %v1006_v13 = vadd.f32 %v2300_v0, %v1005_v12  ;;  %v1793_v15 = vpop.f32.mrb[26].mxu1 }
 0x24b   : > { %v1017_v16 = vadd.f32 %v1793_v15, %v2300_v0  ;;  %v1008_v17 = vpop.f32.mrb[27].mxu1  ;;  %v1110_v20 = vmax.f32 %v1014_v11, 0.0 }
 0x24c   : > { %v1009_v18 = vadd.f32 %v2300_v0, %v1008_v17  ;;  %v1108_v23 = vmax.f32 %v1006_v13, 0.0 }
 0x24d   : > { %v1111_v22 = vmax.f32 %v1017_v16, 0.0 }
 0x24e   : > { %v1109_v24 = vmax.f32 %v1009_v18, 0.0 }
 0x24f   : > { %v1137_v25 = vpack.c.bf16 %v1111_v22, %v1110_v20 }
 0x250   : > { %v1136_v26 = vpack.c.bf16 %v1109_v24, %v1108_v23 }
 0x251   : > { %1157 = vst [vmem:[%s2316_s26 + $0x28] sm:$0xff] %v1137_v25 }
 0x252   : > { %1156 = vst [vmem:[%s2316_s26 + $0x20] sm:$0xff] %v1136_v26 }
 0x258   : > { %v1796_v27 = vpop.f32.mrb[28].mxu1 }
 0x259   : > { %v1030_v29 = vadd.f32 %v1796_v27, %v2300_v0  ;;  %v1021_v30 = vpop.f32.mrb[29].mxu1 }
 0x25a   : > { %v1022_v31 = vadd.f32 %v2300_v0, %v1021_v30  ;;  %v1797_v32 = vpop.f32.mrb[30].mxu1 }
 0x25b   : > { %v1033_v34 = vadd.f32 %v1797_v32, %v2300_v0  ;;  %v1024_v36 = vpop.f32.mrb[31].mxu1  ;;  %v1114_v38 = vmax.f32 %v1030_v29, 0.0 }
 0x25c   : > { %v1025_v37 = vadd.f32 %v2300_v0, %v1024_v36  ;;  %v1112_v40 = vmax.f32 %v1022_v31, 0.0 }
 0x25d   : > { %v1115_v39 = vmax.f32 %v1033_v34, 0.0 }
 0x25e   : > { %v1113_v41 = vmax.f32 %v1025_v37, 0.0 }
 0x25f   : > { %v1139_v43 = vpack.c.bf16 %v1115_v39, %v1114_v38 }
 0x260   : > { %v1138_v44 = vpack.c.bf16 %v1113_v41, %v1112_v40  ;;  %v1270_v41 = vmul.f32 (!%p1604_p11), 0.0625, %v1100_v49 }
 0x261   : > { %1159 = vst [vmem:[%s2316_s26 + $0x38] sm:$0xff] %v1139_v43  ;;  %v1271_v43 = vmul.f32 (!%p1604_p11), 0.0625, %v1101_v54 }
 0x262   : > { %1158 = vst [vmem:[%s2316_s26 + $0x30] sm:$0xff] %v1138_v44 }
 0x263   : > { %v1335_v44 = vadd.f32 (!%p1604_p11), %v1271_v43, %v1270_v41 }
 0x268   : > { %v1800_v45 = vpop.f32.mrb[32].mxu1 }
 0x269   : > { %v1046_v46 = vadd.f32 %v1800_v45, %v2300_v0  ;;  %v1037_v48 = vpop.f32.mrb[33].mxu1  ;;  %v1366_v45 = vrot.slane (!%p1604_p11), %v1335_v44, 4 }
 0x26a   : > { %v1038_v50 = vadd.f32 %v2300_v0, %v1037_v48  ;;  %v1801_v51 = vpop.f32.mrb[34].mxu1 }
 0x26b   : > { %v1049_v52 = vadd.f32 %v1801_v51, %v2300_v0  ;;  %v1040_v53 = vpop.f32.mrb[35].mxu1  ;;  %v1118_v7 = vmax.f32 %v1046_v46, 0.0  ;;  %v1334_v51 = vld [vmem:[#allocation4] sm:$0x1] (!%p1604_p11) }
 0x26c   : > { %v1041_v5 = vadd.f32 %v2300_v0, %v1040_v53  ;;  %v1116_v21 = vmax.f32 %v1038_v50, 0.0 }
 0x26d   : > { %v1119_v14 = vmax.f32 %v1049_v52, 0.0 }
 0x26e   : > { %v1117_v28 = vmax.f32 %v1041_v5, 0.0 }
 0x26f   : > { %v1141_v33 = vpack.c.bf16 %v1119_v14, %v1118_v7 }
 0x270   : > { %v1140_v42 = vpack.c.bf16 %v1117_v28, %v1116_v21 }
 0x271   : > { %1161 = vst [vmem:[%s2316_s26 + $0x48] sm:$0xff] %v1141_v33 }
 0x272   : > { %1160 = vst [vmem:[%s2316_s26 + $0x40] sm:$0xff] %v1140_v42 }
 0x278   : > { %v1804_v47 = vpop.f32.mrb[36].mxu1 }
 0x279   : > { %v1062_v55 = vadd.f32 %v1804_v47, %v2300_v0  ;;  %v1053_v56 = vpop.f32.mrb[37].mxu1 }
 0x27a   : > { %v1054_v57 = vadd.f32 %v2300_v0, %v1053_v56  ;;  %v1805_v58 = vpop.f32.mrb[38].mxu1 }
 0x27b   : > { %v1065_v59 = vadd.f32 %v1805_v58, %v2300_v0  ;;  %v1056_v60 = vpop.f32.mrb[39].mxu1  ;;  %v1122_v62 = vmax.f32 %v1062_v55, 0.0 }
 0x27c   : > { %v1057_v61 = vadd.f32 %v2300_v0, %v1056_v60  ;;  %v1120_v1 = vmax.f32 %v1054_v57, 0.0 }
 0x27d   : > { %v1123_v63 = vmax.f32 %v1065_v59, 0.0 }
 0x27e   : > { %v1121_v2 = vmax.f32 %v1057_v61, 0.0 }
 0x27f   : > { %v1143_v3 = vpack.c.bf16 %v1123_v63, %v1122_v62 }
 0x280   : > { %v1142_v4 = vpack.c.bf16 %v1121_v2, %v1120_v1  ;;  %v1808_v6 = vpop.f32.mrb[40].mxu1 }
 0x281   : > { %1163 = vst [vmem:[%s2316_s26 + $0x58] sm:$0xff] %v1143_v3  ;;  %v1078_v8 = vadd.f32 %v1808_v6, %v2300_v0  ;;  %v1069_v9 = vpop.f32.mrb[41].mxu1 }
 0x282   : > { %1162 = vst [vmem:[%s2316_s26 + $0x50] sm:$0xff] %v1142_v4  ;;  %v1070_v10 = vadd.f32 %v2300_v0, %v1069_v9  ;;  %v1809_v11 = vpop.f32.mrb[42].mxu1 }
 0x283   : > { %v1081_v12 = vadd.f32 %v1809_v11, %v2300_v0  ;;  %v1072_v13 = vpop.f32.mrb[43].mxu1  ;;  %v1126_v16 = vmax.f32 %v1078_v8, 0.0 }
 0x284   : > { %v1073_v15 = vadd.f32 %v2300_v0, %v1072_v13  ;;  %v1124_v18 = vmax.f32 %v1070_v10, 0.0 }
 0x285   : > { %v1127_v17 = vmax.f32 %v1081_v12, 0.0 }
 0x286   : > { %v1125_v20 = vmax.f32 %v1073_v15, 0.0 }
 0x287   : > { %v1145_v22 = vpack.c.bf16 %v1127_v17, %v1126_v16 }
 0x288   : > { %v1144_v23 = vpack.c.bf16 %v1125_v20, %v1124_v18  ;;  %v1812_v24 = vpop.f32.mrb[44].mxu1 }
 0x289   : > { %1165 = vst [vmem:[%s2316_s26 + $0x68] sm:$0xff] %v1145_v22  ;;  %v1094_v25 = vadd.f32 %v1812_v24, %v2300_v0  ;;  %v1085_v26 = vpop.f32.mrb[45].mxu1 }
 0x28a   : > { %1164 = vst [vmem:[%s2316_s26 + $0x60] sm:$0xff] %v1144_v23  ;;  %v1086_v27 = vadd.f32 %v2300_v0, %v1085_v26  ;;  %v1813_v29 = vpop.f32.mrb[46].mxu1 }
 0x28b   : > { %v1097_v30 = vadd.f32 %v1813_v29, %v2300_v0  ;;  %v1088_v31 = vpop.f32.mrb[47].mxu1  ;;  %v1130_v34 = vmax.f32 %v1094_v25, 0.0 }
 0x28c   : > { %v1089_v32 = vadd.f32 %v2300_v0, %v1088_v31  ;;  %v1128_v37 = vmax.f32 %v1086_v27, 0.0  ;;  %1171 = sbr.rel (%p1604_p11) target bundleno = 665 (0x299), region = 117  ;;  %v1367_v0 = vadd.f32 (!%p1604_p11), %v1366_v45, %v1335_v44 }
 0x28d   : > { %v1131_v36 = vmax.f32 %v1097_v30, 0.0 }
 0x28e   : > { %v1129_v38 = vmax.f32 %v1089_v32, 0.0  ;;  %v1368_v46 = vrot.slane (!%p1604_p11), %v1367_v0, 2 }
 0x28f   : > { %v1147_v39 = vpack.c.bf16 %v1131_v36, %v1130_v34 }
 0x290   : > { %v1146_v40 = vpack.c.bf16 %v1129_v38, %v1128_v37  ;;  %v1369_v48 = vadd.f32 (!%p1604_p11), %v1368_v46, %v1367_v0 }
 0x291   : > { %1167 = vst [vmem:[%s2316_s26 + $0x78] sm:$0xff] %v1147_v39 }
 0x292   : > { %1166 = vst [vmem:[%s2316_s26 + $0x70] sm:$0xff] %v1146_v40  ;;  %v1370_v50 = vrot.slane (!%p1604_p11), %v1369_v48, 1 }
 0x294   : > { %v1371_v52 = vadd.f32 %v1370_v50, %v1369_v48 }
 0x296   : > { %v1372_v53 = vadd.f32 %v1371_v52, %v1334_v51 }
 0x298   : > { %1373 = vst [vmem:[#allocation4] sm:$0x1] %v1372_v53 }
 0x299 PF: > { %1377 = sbr.rel (!%p1168_p8) target bundleno = 913 (0x391), region = 121  ;;  %v1892_v19 = vld [vmem:[%s2437_s4] sm:$0xff] (%p1168_p8)   ;;  %v1959_v35 = vmov (%p1168_p8), 0.0   ;;  %v1893_v49 = vld [vmem:[%s2437_s4 + $0x8] sm:$0xff] (%p1168_p8)   ;;  %vm1960_vm0 = vmmov (%p1168_p8), 0   ;;  %v1894_v54 = vld [vmem:[%s2437_s4 + $0x10] sm:$0xff] (%p1168_p8)  }
 0x29a   : > { %1814 = vmatprep.subr.bf16.mxu0 (%p1168_p8), %v1959_v35  ;;  %1830 = vmatprep.mubr.msk.bf16.mxu0 (%p1168_p8), %vm1960_vm0, %v1959_v35  ;;  %v1895_v5 = vld [vmem:[%s2437_s4 + $0x18] sm:$0xff] (%p1168_p8)   ;;  %v1896_v7 = vld [vmem:[%s2437_s4 + $0x20] sm:$0xff] (%p1168_p8)   ;;  %v1897_v14 = vld [vmem:[%s2437_s4 + $0x28] sm:$0xff] (%p1168_p8)  }
 0x29b   : > { %1815 = vmatpush3.bf16.msra.mxu0 (%p1168_p8), %v1892_v19  ;;  %v1898_v21 = vld [vmem:[%s2437_s4 + $0x30] sm:$0xff] (%p1168_p8)   ;;  %v1899_v28 = vld [vmem:[%s2437_s4 + $0x38] sm:$0xff] (%p1168_p8)   ;;  %v1396_v47 = vld [vmem:[%s2438_s5] sm:$0x1] (%p1168_p8) }
 0x29c   : > { %1816 = vmatprep.subr.bf16.mxu0 (%p1168_p8), %v1959_v35 }
 0x29f   : > { %1817 = vmatpush3.bf16.msra.mxu0 (%p1168_p8), %v1893_v49  ;;  %v1378_v33 = vld [vmem:[#allocation4] sm:$0x1] (%p1168_p8) }
 0x2a0   : > { %1818 = vmatprep.subr.bf16.mxu0 %v1959_v35  ;;  %v1379_v42 = vpack.c.bf16 %v1378_v33, %v1378_v33 }
 0x2a3   : > { %1819 = vmatpush3.bf16.msra.mxu0 %v1894_v54 }
 0x2a4   : > { %1820 = vmatprep.subr.bf16.mxu0 %v1959_v35 }
 0x2a7   : > { %1821 = vmatpush3.bf16.msra.mxu0 %v1895_v5 }
 0x2a8   : > { %1822 = vmatprep.subr.bf16.mxu0 %v1959_v35 }
 0x2ab   : > { %1823 = vmatpush3.bf16.msra.mxu0 %v1896_v7 }
 0x2ac   : > { %1824 = vmatprep.subr.bf16.mxu0 %v1959_v35 }
 0x2af   : > { %1825 = vmatpush3.bf16.msra.mxu0 %v1897_v14 }
 0x2b0   : > { %1826 = vmatprep.subr.bf16.mxu0 %v1959_v35 }
 0x2b3   : > { %1827 = vmatpush3.bf16.msra.mxu0 %v1898_v21 }
 0x2b4   : > { %1828 = vmatprep.subr.bf16.mxu0 %v1959_v35 }
 0x2b7   : > { %1829 = vmatpush3.bf16.msra.mxu0 %v1899_v28 }
 0x2ba   : > { %1831 = vmatmul.mubr.bf16.vlgmr.msra.gmra.mrb[0].mxu0 %v1379_v42 }
 0x38d   : > { %v1479_v55 = vpop.f32.mrb[0].mxu0 }
 0x38e   : > { %v1480_v56 = vadd.f32 %v1479_v55, %v1396_v47  ;;  %v1832_v57 = vpop.f32.mrb[1].mxu0 }
 0x38f   : > { %v1482_v58 = vpop.f32.mrb[2].mxu0 }
 0x390   : > { %1485 = vst [vmem:[#allocation5] sm:$0x1] %v1480_v56  ;;  %v1833_v59 = vpop.f32.mrb[3].mxu0 }
 0x391 PF: > { %p2398_p12 = scmp.eq.s32.totalorder %s1578_s24, 1  ;;  %s1961_s26 = smov [#allocation5]  }
 0x392   : > { %s1493_s30 = sshll.u32 %s1961_s26, 4  ;;  %s1494_s30 = int_to_ptr.vmem [resolvable:$true] %s1493_s30 }
 0x393   : > { %s1900_s15 = scalar_lea.vmem %s1494_s30, 16  ;;  %s1906_s16 = scalar_lea.vmem %s1494_s30, 32 }
 0x394   : > { %p1901_p13 = scmp.ne.s32.totalorder %s1494_s30, %s1900_s15  ;;  %p1907_p2 = scmp.lt.s32.totalorder %s1494_s30, %s1494_s30 }
 0x395   : > { %p1908_p3 = scmp.lt.s32.totalorder %s1906_s16, %s1900_s15 }
 0x396   : > { %p1902_p0 = pnand %p1901_p13, %p2398_p12 }
 0x397   : > { %p1909_p4 = por %p1908_p3, %p1907_p2 }
 0x398   : > { %p1903_p1 = pneg %p1902_p0 }
 0x39a   : > { %p1910_p5 = pnand %p1909_p4, %p1903_p1 }
 0x39c   : > { %1913 = shalt.err (!%p1910_p5)
}
 0x39d   : > { %s1914_s18 = scalar_lea.hbm %s2439_s6, 16 }
 0x39e   : > { %p1915_p6 = scmp.ne.s32.totalorder %s2439_s6, %s1914_s18  ;;  %p1920_p9 = scmp.lt.u32.totalorder %s1914_s18, %s2439_s6 }
 0x3a0   : > { %p1916_p7 = pnand %p1915_p6, %p2398_p12 }
 0x3a2   : > { %p1917_p8 = pneg %p1916_p7 }
 0x3a4   : > { %p1922_p10 = pnand %p1920_p9, %p1917_p8 }
 0x3a6   : > { %1925 = shalt.err (!%p1922_p10)
}
 0x3a7   : > { %1851 = dma.vmem_to_hbm [thread:$0]  (%p2398_p12), %s1494_s30, 16, %s2439_s6, [#allocation6]  }
 0x3a8   : > { %1943 = dma.done.wait (%p2398_p12), [#allocation6], 16  }
 0x3a9   : > { %1945 = vsyncadd (%p2398_p12), [#allocation6], 4294967280 }
 0x3aa PF: > { %s17_s23 = sadd.s32 1, %s1956_s23   ;;  %s2441_s21 = smov %s1952_s22 }
 0x3ab   : > { %p14_p11 = scmp.ge.s32.totalorder %s17_s23, 4   ;;  %s2442_s22 = smov %s2444_s25 }
 0x3ad   :  { %16 = sbr.rel (!%p14_p11) target bundleno = 2 (0x2), region = 177 }
 0x3b4   :  { %1506 = vsyncpa [#allocation6], 1 }
 0x3b5   :  { %1508 = vsyncpa [#allocation6 + $0x1], 1 }

</bundles_post_ra>
